<compile_context>
chip_gen: v6e
topology: v6e:2x2x1
jax: 0.10.0
libtpu: 0.0.40
codegen_flags: <defaults>
</compile_context>

<pallas_src>
import functools
from typing import NamedTuple, Optional

import jax
import jax.numpy as jnp
from jax.experimental import pallas as pl
from jax.experimental.pallas import tpu as pltpu


def _round_up(x: int, m: int) -> int:
    return ((x + m - 1) // m) * m


class HeadParams(NamedTuple):
    w1: jax.Array   # [infeat, H]  (H = hidden padded to 128), compute dtype
    b1: jax.Array   # [1, H]       f32
    w2: jax.Array   # [H, N]       (N = num_labels padded to 128), compute dtype
    b2: jax.Array   # [1, N]       f32


def prepare_head_params(w1, b1, w2, b2, *, compute_dtype=jnp.bfloat16):
    """Pad / cast the head weights ONCE at model-load time.

    w1: [infeat, hidden]; b1: [hidden]; w2: [hidden, num_labels]; b2: [num_labels]
    (weights are stored transposed vs. PyTorch's [out, in]).

    Lane axes (hidden / num_labels) are zero-padded to multiples of 128 so the
    kernel gets full-width MXU tiles and a lane-dense output store.  The K
    (infeat) axis is left unpadded (full-dim blocks are legal).  Zero padding
    is exact: padded hidden units are tanh(0 + 0) = 0 and meet zero rows of
    W2; padded label columns are sliced off by the caller.

    compute_dtype: matmul operand dtype.  bf16 is the right default on all of
    v5e/v6e/v7x (v5e's MXU has no native f32 path); pass None for exact f32
    operands.  Biases always stay f32 (added to the f32 accumulators).
    """
    infeat, hidden = w1.shape
    num_labels = w2.shape[1]
    H = _round_up(hidden, 128)
    N = _round_up(num_labels, 128)

    w1_p = jnp.pad(w1, ((0, 0), (0, H - hidden)))
    b1_p = jnp.pad(b1, (0, H - hidden)).reshape(1, H).astype(jnp.float32)
    w2_p = jnp.pad(w2, ((0, H - hidden), (0, N - num_labels)))
    b2_p = jnp.pad(b2, (0, N - num_labels)).reshape(1, N).astype(jnp.float32)

    if compute_dtype is not None:
        w1_p = w1_p.astype(compute_dtype)
        w2_p = w2_p.astype(compute_dtype)

    return HeadParams(w1_p, b1_p, w2_p, b2_p), num_labels


def _head_kernel(x_ref, w1_ref, b1_ref, w2_ref, b2_ref, o_ref):
    # x_ref:  [TILE_B, K]   (K = infeat, unpadded)
    # w1_ref: [K, H], b1_ref: [1, H]
    # w2_ref: [H, N], b2_ref: [1, N]   (N lane-dense, multiple of 128)
    # o_ref:  [TILE_B, N]
    x = x_ref[...].astype(w1_ref.dtype)                  # cast on VPU, in-kernel
    h = jnp.dot(x, w1_ref[...], preferred_element_type=jnp.float32)
    h = jnp.tanh(h + b1_ref[...])                        # bias add + tanh in f32
    y = jnp.dot(h.astype(w2_ref.dtype), w2_ref[...],
                preferred_element_type=jnp.float32)
    o_ref[...] = (y + b2_ref[...]).astype(o_ref.dtype)


@functools.partial(
    jax.jit,
    static_argnames=("num_labels", "tile_b", "single_buffer_weights"))
def _head_call(features, params, *, num_labels, tile_b, single_buffer_weights):
    B, infeat = features.shape
    w1, b1, w2, b2 = params
    K = infeat
    H = w1.shape[1]
    N = w2.shape[1]
    out_dtype = features.dtype

    # Sublane alignment: bf16 packs 16 rows per vreg, f32 packs 8.
    align = 16 if jnp.dtype(w1.dtype).itemsize < 4 else 8

    if tile_b is None:
        cap = 512                       # bigger tiles -> denser DMAs, fewer grid steps
        if B >= 2 * cap:
            tile_b = cap
        elif B >= 2 * align:
            # >= 2 batch tiles so the "parallel" grid axis can shard across
            # both v7x TensorCores (a single step leaves one TC idle).
            tile_b = _round_up((B + 1) // 2, align)
        else:
            tile_b = _round_up(max(B, 1), align)
    else:
        tile_b = _round_up(tile_b, align)   # keep user-supplied values lowerable

    Bp = _round_up(B, tile_b)
    x = features if Bp == B else jnp.pad(features, ((0, Bp - B), (0, 0)))

    # Grid-invariant weights/biases: single VMEM buffer (default is 2).
    w_mode = pl.Buffered(1) if single_buffer_weights else None

    out_padded = pl.pallas_call(
        _head_kernel,
        out_shape=jax.ShapeDtypeStruct((Bp, N), out_dtype),
        grid=(Bp // tile_b,),
        in_specs=[
            pl.BlockSpec((tile_b, K), lambda i: (i, 0)),      # activations: batch-tiled
            pl.BlockSpec((K, H), lambda i: (0, 0), pipeline_mode=w_mode),  # W1 resident
            pl.BlockSpec((1, H), lambda i: (0, 0), pipeline_mode=w_mode),  # b1
            pl.BlockSpec((H, N), lambda i: (0, 0), pipeline_mode=w_mode),  # W2 resident
            pl.BlockSpec((1, N), lambda i: (0, 0), pipeline_mode=w_mode),  # b2
        ],
        out_specs=pl.BlockSpec((tile_b, N), lambda i: (i, 0)),   # lane-dense store
        compiler_params=pltpu.CompilerParams(
            dimension_semantics=("parallel",)),
    )(x, w1, b1, w2, b2)

    return out_padded[:B, :num_labels]


_single_buffer_weights = True   # flipped to False if pl.Buffered(1) is rejected


def roberta_classification_head(features, params: HeadParams, *,
                                num_labels: int, tile_b: Optional[int] = None):
    """out = tanh(features @ W1 + b1) @ W2 + b2   (dropout = identity, inference).

    `params` must come from prepare_head_params() (padded/cast once at load
    time).  For very small batches a plain fused XLA dot+tanh+dot is equally
    fast; the Pallas path is kept unconditional here so it is always exercised.
    """
    global _single_buffer_weights
    if _single_buffer_weights:
        try:
            return _head_call(features, params, num_labels=num_labels,
                              tile_b=tile_b, single_buffer_weights=True)
        except Exception:
            # pl.Buffered(1) not supported by this jax/libtpu build -> fall
            # back to default double-buffering of the grid-invariant weights.
            _single_buffer_weights = False
    return _head_call(features, params, num_labels=num_labels,
                      tile_b=tile_b, single_buffer_weights=False)


def _ref_forward(features, w1, b1, w2, b2):
    h = jnp.tanh(features @ w1 + b1)
    return h @ w2 + b2


if __name__ == "__main__":
    # Small shapes consistent with the module: infeat=32, hidden=32, num_labels=4.
    B, INFEAT, HIDDEN, NUM_LABELS = 8, 32, 32, 4

    key = jax.random.PRNGKey(0)
    kx, kw1, kb1, kw2, kb2 = jax.random.split(key, 5)

    features = jax.random.normal(kx, (B, INFEAT), dtype=jnp.float32)

    # nn.Linear-style init (uniform +-1/sqrt(fan_in)), stored [in, out].
    lim1 = 1.0 / (INFEAT ** 0.5)
    w1 = jax.random.uniform(kw1, (INFEAT, HIDDEN), jnp.float32, -lim1, lim1)
    b1 = jax.random.uniform(kb1, (HIDDEN,), jnp.float32, -lim1, lim1)
    lim2 = 1.0 / (HIDDEN ** 0.5)
    w2 = jax.random.uniform(kw2, (HIDDEN, NUM_LABELS), jnp.float32, -lim2, lim2)
    b2 = jax.random.uniform(kb2, (NUM_LABELS,), jnp.float32, -lim2, lim2)

    ref = _ref_forward(features, w1, b1, w2, b2)

    # 1) f32-operand path: exact vs reference.
    params_f32, n_labels = prepare_head_params(w1, b1, w2, b2, compute_dtype=None)
    out = roberta_classification_head(features, params_f32, num_labels=n_labels)
    out = jax.block_until_ready(out)
    assert out.shape == (B, NUM_LABELS), out.shape
    assert jnp.allclose(out, ref, atol=1e-5, rtol=1e-5), "f32 mismatch vs reference"

    # 2) Default path: bf16 matmul operands (all generations), f32 accumulation.
    params_bf16, _ = prepare_head_params(w1, b1, w2, b2)   # compute_dtype=bf16
    out_bf16 = roberta_classification_head(features, params_bf16, num_labels=n_labels)
    out_bf16 = jax.block_until_ready(out_bf16)
    assert out_bf16.shape == (B, NUM_LABELS), out_bf16.shape
    assert jnp.allclose(out_bf16, ref, atol=2e-2, rtol=2e-2), "bf16 mismatch"

    print("KERNEL_OK")
</pallas_src>

<mosaic_0001>
module attributes {stable_mosaic.version = 11 : i64} {
  func.func @_head_kernel(%arg0: i32, %arg1: memref<8x32xf32, #tpu.memory_space<vmem>>, %arg2: memref<32x128xf32, #tpu.memory_space<vmem>>, %arg3: memref<1x128xf32, #tpu.memory_space<vmem>>, %arg4: memref<128x128xf32, #tpu.memory_space<vmem>>, %arg5: memref<1x128xf32, #tpu.memory_space<vmem>>, %arg6: memref<8x128xf32, #tpu.memory_space<vmem>>) attributes {dimension_semantics = [#tpu.dimension_semantics<parallel>], iteration_bounds = array<i64: 1>, scalar_prefetch = 0 : i64, scratch_operands = 0 : i64, tpu.core_type = #tpu.core_type<tc>, window_params = [{transform_indices = @transform_0, window_bounds = array<i64: 8, 32>}, {pipeline_mode = #tpu.pipeline_mode<synchronous>, transform_indices = @transform_1, window_bounds = array<i64: 32, 128>}, {pipeline_mode = #tpu.pipeline_mode<synchronous>, transform_indices = @transform_2, window_bounds = array<i64: 1, 128>}, {pipeline_mode = #tpu.pipeline_mode<synchronous>, transform_indices = @transform_3, window_bounds = array<i64: 128, 128>}, {pipeline_mode = #tpu.pipeline_mode<synchronous>, transform_indices = @transform_4, window_bounds = array<i64: 1, 128>}, {transform_indices = @transform_5, window_bounds = array<i64: 8, 128>}]} {
    %c0 = arith.constant 0 : index
    %c0_0 = arith.constant 0 : index
    %0 = vector.load %arg1[%c0, %c0_0] : memref<8x32xf32, #tpu.memory_space<vmem>>, vector<8x32xf32>
    %c0_1 = arith.constant 0 : index
    %c0_2 = arith.constant 0 : index
    %1 = vector.load %arg2[%c0_1, %c0_2] : memref<32x128xf32, #tpu.memory_space<vmem>>, vector<32x128xf32>
    %cst = arith.constant dense<0.000000e+00> : vector<8x128xf32>
    %2 = tpu.matmul %0, %1, %cst {dimension_numbers = #tpu.dot_dimension_numbers<[1], [0], [0], [1], [0, 0, 1, 1], [], []>} : vector<8x32xf32>, vector<32x128xf32>, vector<8x128xf32> -> vector<8x128xf32>
    %c0_3 = arith.constant 0 : index
    %c0_4 = arith.constant 0 : index
    %3 = vector.load %arg3[%c0_3, %c0_4] : memref<1x128xf32, #tpu.memory_space<vmem>>, vector<1x128xf32>
    %4 = vector.broadcast %3 : vector<1x128xf32> to vector<8x128xf32>
    %5 = arith.addf %2, %4 : vector<8x128xf32>
    %6 = math.tanh %5 : vector<8x128xf32>
    %c0_5 = arith.constant 0 : index
    %c0_6 = arith.constant 0 : index
    %7 = vector.load %arg4[%c0_5, %c0_6] : memref<128x128xf32, #tpu.memory_space<vmem>>, vector<128x128xf32>
    %cst_7 = arith.constant dense<0.000000e+00> : vector<8x128xf32>
    %8 = tpu.matmul %6, %7, %cst_7 {dimension_numbers = #tpu.dot_dimension_numbers<[1], [0], [0], [1], [0, 0, 1, 1], [], []>} : vector<8x128xf32>, vector<128x128xf32>, vector<8x128xf32> -> vector<8x128xf32>
    %c0_8 = arith.constant 0 : index
    %c0_9 = arith.constant 0 : index
    %9 = vector.load %arg5[%c0_8, %c0_9] : memref<1x128xf32, #tpu.memory_space<vmem>>, vector<1x128xf32>
    %10 = vector.broadcast %9 : vector<1x128xf32> to vector<8x128xf32>
    %11 = arith.addf %8, %10 : vector<8x128xf32>
    %c0_10 = arith.constant 0 : index
    %c0_11 = arith.constant 0 : index
    %12 = vector.load %arg6[%c0_10, %c0_11] : memref<8x128xf32, #tpu.memory_space<vmem>>, vector<8x128xf32>
    tpu.vector_store %arg6[%c0_10, %c0_11], %11 {strides = array<i32>} : memref<8x128xf32, #tpu.memory_space<vmem>>, vector<8x128xf32>,
    return
  }
  func.func @transform_0(%arg0: i32) -> (i32, i32) {
    %c0_i32 = arith.constant 0 : i32
    %c0_i32_0 = arith.constant 0 : i32
    return %arg0, %c0_i32 : i32, i32
  }
  func.func @transform_1(%arg0: i32) -> (i32, i32) {
    %c0_i32 = arith.constant 0 : i32
    %c0_i32_0 = arith.constant 0 : i32
    %c0_i32_1 = arith.constant 0 : i32
    return %c0_i32, %c0_i32_0 : i32, i32
  }
  func.func @transform_2(%arg0: i32) -> (i32, i32) {
    %c0_i32 = arith.constant 0 : i32
    %c0_i32_0 = arith.constant 0 : i32
    %c0_i32_1 = arith.constant 0 : i32
    return %c0_i32, %c0_i32_0 : i32, i32
  }
  func.func @transform_3(%arg0: i32) -> (i32, i32) {
    %c0_i32 = arith.constant 0 : i32
    %c0_i32_0 = arith.constant 0 : i32
    %c0_i32_1 = arith.constant 0 : i32
    return %c0_i32, %c0_i32_0 : i32, i32
  }
  func.func @transform_4(%arg0: i32) -> (i32, i32) {
    %c0_i32 = arith.constant 0 : i32
    %c0_i32_0 = arith.constant 0 : i32
    %c0_i32_1 = arith.constant 0 : i32
    return %c0_i32, %c0_i32_0 : i32, i32
  }
  func.func @transform_5(%arg0: i32) -> (i32, i32) {
    %c0_i32 = arith.constant 0 : i32
    %c0_i32_0 = arith.constant 0 : i32
    return %arg0, %c0_i32 : i32, i32
  }
}

module attributes {stable_mosaic.version = 11 : i64} {
  func.func @_head_kernel(%arg0: i32, %arg1: memref<8x32xf32, #tpu.memory_space<vmem>>, %arg2: memref<32x128xf32, #tpu.memory_space<vmem>>, %arg3: memref<1x128xf32, #tpu.memory_space<vmem>>, %arg4: memref<128x128xf32, #tpu.memory_space<vmem>>, %arg5: memref<1x128xf32, #tpu.memory_space<vmem>>, %arg6: memref<8x128xf32, #tpu.memory_space<vmem>>) attributes {dimension_semantics = [#tpu.dimension_semantics<parallel>], iteration_bounds = array<i64: 1>, scalar_prefetch = 0 : i64, scratch_operands = 0 : i64, tpu.core_type = #tpu.core_type<tc>, window_params = [{transform_indices = @transform_0, window_bounds = array<i64: 8, 32>}, {pipeline_mode = #tpu.pipeline_mode<synchronous>, transform_indices = @transform_1, window_bounds = array<i64: 32, 128>}, {pipeline_mode = #tpu.pipeline_mode<synchronous>, transform_indices = @transform_2, window_bounds = array<i64: 1, 128>}, {pipeline_mode = #tpu.pipeline_mode<synchronous>, transform_indices = @transform_3, window_bounds = array<i64: 128, 128>}, {pipeline_mode = #tpu.pipeline_mode<synchronous>, transform_indices = @transform_4, window_bounds = array<i64: 1, 128>}, {transform_indices = @transform_5, window_bounds = array<i64: 8, 128>}]} {
    %c0 = arith.constant 0 : index
    %c0_0 = arith.constant 0 : index
    %0 = vector.load %arg1[%c0, %c0_0] : memref<8x32xf32, #tpu.memory_space<vmem>>, vector<8x32xf32>
    %c0_1 = arith.constant 0 : index
    %c0_2 = arith.constant 0 : index
    %1 = vector.load %arg2[%c0_1, %c0_2] : memref<32x128xf32, #tpu.memory_space<vmem>>, vector<32x128xf32>
    %cst = arith.constant dense<0.000000e+00> : vector<8x128xf32>
    %2 = tpu.matmul %0, %1, %cst {dimension_numbers = #tpu.dot_dimension_numbers<[1], [0], [0], [1], [0, 0, 1, 1], [], []>} : vector<8x32xf32>, vector<32x128xf32>, vector<8x128xf32> -> vector<8x128xf32>
    %c0_3 = arith.constant 0 : index
    %c0_4 = arith.constant 0 : index
    %3 = vector.load %arg3[%c0_3, %c0_4] : memref<1x128xf32, #tpu.memory_space<vmem>>, vector<1x128xf32>
    %4 = vector.broadcast %3 : vector<1x128xf32> to vector<8x128xf32>
    %5 = arith.addf %2, %4 : vector<8x128xf32>
    %6 = math.tanh %5 : vector<8x128xf32>
    %c0_5 = arith.constant 0 : index
    %c0_6 = arith.constant 0 : index
    %7 = vector.load %arg4[%c0_5, %c0_6] : memref<128x128xf32, #tpu.memory_space<vmem>>, vector<128x128xf32>
    %cst_7 = arith.constant dense<0.000000e+00> : vector<8x128xf32>
    %8 = tpu.matmul %6, %7, %cst_7 {dimension_numbers = #tpu.dot_dimension_numbers<[1], [0], [0], [1], [0, 0, 1, 1], [], []>} : vector<8x128xf32>, vector<128x128xf32>, vector<8x128xf32> -> vector<8x128xf32>
    %c0_8 = arith.constant 0 : index
    %c0_9 = arith.constant 0 : index
    %9 = vector.load %arg5[%c0_8, %c0_9] : memref<1x128xf32, #tpu.memory_space<vmem>>, vector<1x128xf32>
    %10 = vector.broadcast %9 : vector<1x128xf32> to vector<8x128xf32>
    %11 = arith.addf %8, %10 : vector<8x128xf32>
    %c0_10 = arith.constant 0 : index
    %c0_11 = arith.constant 0 : index
    %12 = vector.load %arg6[%c0_10, %c0_11] : memref<8x128xf32, #tpu.memory_space<vmem>>, vector<8x128xf32>
    tpu.vector_store %arg6[%c0_10, %c0_11], %11 {strides = array<i32>} : memref<8x128xf32, #tpu.memory_space<vmem>>, vector<8x128xf32>,
    return
  }
  func.func @transform_0(%arg0: i32) -> (i32, i32) {
    %c0_i32 = arith.constant 0 : i32
    %c0_i32_0 = arith.constant 0 : i32
    return %arg0, %c0_i32 : i32, i32
  }
  func.func @transform_1(%arg0: i32) -> (i32, i32) {
    %c0_i32 = arith.constant 0 : i32
    %c0_i32_0 = arith.constant 0 : i32
    %c0_i32_1 = arith.constant 0 : i32
    return %c0_i32, %c0_i32_0 : i32, i32
  }
  func.func @transform_2(%arg0: i32) -> (i32, i32) {
    %c0_i32 = arith.constant 0 : i32
    %c0_i32_0 = arith.constant 0 : i32
    %c0_i32_1 = arith.constant 0 : i32
    return %c0_i32, %c0_i32_0 : i32, i32
  }
  func.func @transform_3(%arg0: i32) -> (i32, i32) {
    %c0_i32 = arith.constant 0 : i32
    %c0_i32_0 = arith.constant 0 : i32
    %c0_i32_1 = arith.constant 0 : i32
    return %c0_i32, %c0_i32_0 : i32, i32
  }
  func.func @transform_4(%arg0: i32) -> (i32, i32) {
    %c0_i32 = arith.constant 0 : i32
    %c0_i32_0 = arith.constant 0 : i32
    %c0_i32_1 = arith.constant 0 : i32
    return %c0_i32, %c0_i32_0 : i32, i32
  }
  func.func @transform_5(%arg0: i32) -> (i32, i32) {
    %c0_i32 = arith.constant 0 : i32
    %c0_i32_0 = arith.constant 0 : i32
    return %arg0, %c0_i32 : i32, i32
  }
}

</mosaic_0001>

<bundles_post_ra>
// kernel: _head_call.1
= control target key start
LH: loop header
LB: loop body
LE: loop exit
PB: predicated region body
PF: predicated region fallthrough
CT: control target
= control target key end

     0   :  { %10 = vsyncpa [#allocation3], 0  ;;  %s467_s0 = inlined_call_operand.hbm [shape: f32[8,32], index: 0, kind: input, shape index: {}]   ;;  %s468_s1 = inlined_call_operand.hbm [shape: f32[32,128], index: 1, kind: input, shape index: {}]   ;;  %s469_s2 = inlined_call_operand.vmem [shape: f32[1,128], index: 2, kind: input, shape index: {}]   ;;  %s470_s3 = inlined_call_operand.hbm [shape: f32[128,128], index: 3, kind: input, shape index: {}]   ;;  %s471_s4 = inlined_call_operand.vmem [shape: f32[1,128], index: 4, kind: input, shape index: {}]   ;;  %s472_s5 = inlined_call_operand.vmem [shape: f32[8,128], index: 5, kind: output, shape index: {}]  }
   0x1   :  { %11 = vsyncpa [#allocation5], 0  ;;  %s390_s18 = smov [#allocation4]  }
   0x2   :  { %s27_s19 = sshll.u32 %s390_s18, 4  ;;  %s28_s19 = int_to_ptr.vmem [resolvable:$true] %s27_s19 }
   0x3   :  { %s334_s20 = scalar_lea.vmem %s28_s19, 512  ;;  %p339_p1 = scmp.lt.s32.totalorder %s28_s19, %s28_s19 }
   0x4   :  { %p335_p0 = scmp.ne.s32.totalorder %s28_s19, %s334_s20  ;;  %p340_p2 = scmp.lt.s32.totalorder %s334_s20, %s334_s20 }
   0x6   :  { %p341_p3 = por %p340_p2, %p339_p1 }
   0x8   :  { %p342_p4 = pnand %p341_p3, %p335_p0 }
   0xa   :  { %345 = shalt.err (!%p342_p4)
}
   0xb   :  { %s391_s21 = smov 128   ;;  %s392_s22 = smov 8  }
   0xc   :  { %33 = dma.hbm_to_vmem [thread:$0]  %s468_s1, 512, %s28_s19, [#allocation5], %s391_s21, %s391_s21, %s392_s22  }
   0xd   :  { %s393_s25 = smov [#allocation2]   ;;  %s394_s27 = smov [#allocation6]  }
   0xe   :  { %s18_s26 = sshll.u32 %s393_s25, 4  ;;  %s41_s28 = sshll.u32 %s394_s27, 4  ;;  %s19_s26 = int_to_ptr.vmem [resolvable:$true] %s18_s26  ;;  %s42_s28 = int_to_ptr.vmem [resolvable:$true] %s41_s28 }
   0xf   :  { %s354_s29 = scalar_lea.vmem %s19_s26, 128  ;;  %p359_p6 = scmp.lt.s32.totalorder %s19_s26, %s19_s26 }
  0x10   :  { %p355_p5 = scmp.ne.s32.totalorder %s19_s26, %s354_s29  ;;  %p360_p7 = scmp.lt.s32.totalorder %s354_s29, %s354_s29 }
  0x12   :  { %p361_p8 = por %p360_p7, %p359_p6 }
  0x14   :  { %p362_p9 = pnand %p361_p8, %p355_p5 }
  0x16   :  { %365 = shalt.err (!%p362_p9)
}
  0x17   :  { %21 = dma.hbm_to_vmem [thread:$0]  %s467_s0, 128, %s19_s26, [#allocation3]  }
  0x18   :  { %s374_s7 = scalar_lea.vmem %s42_s28, 2048  ;;  %p379_p11 = scmp.lt.s32.totalorder %s42_s28, %s42_s28 }
  0x19   :  { %p375_p10 = scmp.ne.s32.totalorder %s42_s28, %s374_s7  ;;  %p380_p12 = scmp.lt.s32.totalorder %s374_s7, %s374_s7 }
  0x1b   :  { %p381_p13 = por %p380_p12, %p379_p11 }
  0x1d   :  { %p382_p0 = pnand %p381_p13, %p375_p10 }
  0x1f   :  { %385 = shalt.err (!%p382_p0)
}
  0x20   :  { %47 = dma.hbm_to_vmem [thread:$0]  %s470_s3, 2048, %s42_s28, [#allocation5], %s391_s21, %s391_s21, %s392_s22  }
  0x21   :  { %386 = dma.done.wait [#allocation3], 128  }
  0x22   :  { %387 = vsyncadd [#allocation3], 4294967168 }
  0x23   :  { %388 = dma.done.wait [#allocation5], 2560  }
  0x24   :  { %389 = vsyncadd [#allocation5], 4294964736  ;;  %v395_v0 = vmov 0.0   ;;  %vm396_vm0 = vmmov 0   ;;  %v63_v1 = vld [vmem:[#allocation4 + $0x18] sm:$0xff]  ;;  %v62_v2 = vld [vmem:[#allocation4 + $0x10] sm:$0xff] }
  0x25   :  { %271 = vmatprep.subr.mxu0 %v395_v0  ;;  %279 = vmatprep.mubr.msk.f32.mxu0 %vm396_vm0, %v395_v0  ;;  %v161_v3 = vld [vmem:[#allocation6 + $0x78] sm:$0xff]  ;;  %v61_v4 = vld [vmem:[#allocation4 + $0x8] sm:$0xff]  ;;  %v160_v5 = vld [vmem:[#allocation6 + $0x70] sm:$0xff]  ;;  %vm71_vm1 = vcmask 261120  }
  0x26   :  { %282 = vmatprep.subr.mxu1 %v395_v0  ;;  %314 = vmatprep.mubr.msk.f32.mxu1 %vm396_vm0, %v395_v0  ;;  %v159_v6 = vld [vmem:[#allocation6 + $0x68] sm:$0xff]  ;;  %v60_v7 = vld [vmem:[#allocation4] sm:$0xff]  ;;  %v59_v8 = vld [vmem:[#allocation2] sm:$0xff] }
  0x27   :  { %272 = vmatpush3.msra.mxu0 %v63_v1  ;;  %283 = vmatpush3.msra.mxu1 %v161_v3  ;;  %v158_v9 = vld [vmem:[#allocation6 + $0x60] sm:$0xff]  ;;  %v157_v10 = vld [vmem:[#allocation6 + $0x58] sm:$0xff]  ;;  %v156_v11 = vld [vmem:[#allocation6 + $0x50] sm:$0xff] }
  0x28   :  { %273 = vmatprep.subr.mxu0 %v395_v0  ;;  %284 = vmatprep.subr.mxu1 %v395_v0  ;;  %v155_v12 = vld [vmem:[#allocation6 + $0x48] sm:$0xff]  ;;  %v154_v13 = vld [vmem:[#allocation6 + $0x40] sm:$0xff]  ;;  %v153_v14 = vld [vmem:[#allocation6 + $0x38] sm:$0xff] }
  0x29   :  { %274 = vmatpush3.msra.mxu0 %v62_v2  ;;  %285 = vmatpush3.msra.mxu1 %v160_v5  ;;  %v152_v15 = vld [vmem:[#allocation6 + $0x30] sm:$0xff]  ;;  %v151_v16 = vld [vmem:[#allocation6 + $0x28] sm:$0xff]  ;;  %v150_v17 = vld [vmem:[#allocation6 + $0x20] sm:$0xff] }
  0x2a   :  { %275 = vmatprep.subr.mxu0 %v395_v0  ;;  %286 = vmatprep.subr.mxu1 %v395_v0  ;;  %v149_v18 = vld [vmem:[#allocation6 + $0x18] sm:$0xff]  ;;  %v148_v19 = vld [vmem:[#allocation6 + $0x10] sm:$0xff]  ;;  %v147_v20 = vld [vmem:[#allocation6 + $0x8] sm:$0xff] }
  0x2b   :  { %276 = vmatpush3.msra.mxu0 %v61_v4  ;;  %287 = vmatpush3.msra.mxu1 %v159_v6  ;;  %v146_v21 = vld [vmem:[#allocation6] sm:$0xff]  ;;  %v246_v22 = vld [vmem:[%s469_s2] ss:$0 sm:$0xff] }
  0x2c   :  { %277 = vmatprep.subr.mxu0 %v395_v0  ;;  %288 = vmatprep.subr.mxu1 %v395_v0  ;;  %v248_v27 = vld [vmem:[%s471_s4] ss:$0 sm:$0xff] }
  0x2d   :  { %278 = vmatpush3.msra.mxu0 %v60_v7  ;;  %289 = vmatpush3.msra.mxu1 %v158_v9 }
  0x2e   :  { %280 = vmatmul.mubr.msk.f32.vlgmr.msra.gmra.mxu0 %vm71_vm1, %v59_v8  ;;  %290 = vmatprep.subr.mxu1 %v395_v0 }
  0x2f   :  { %291 = vmatpush3.msra.mxu1 %v157_v10 }
  0x30   :  { %292 = vmatprep.subr.mxu1 %v395_v0 }
  0x31   :  { %293 = vmatpush3.msra.mxu1 %v156_v11 }
  0x32   :  { %294 = vmatprep.subr.mxu1 %v395_v0 }
  0x33   :  { %295 = vmatpush3.msra.mxu1 %v155_v12 }
  0x34   :  { %296 = vmatprep.subr.mxu1 %v395_v0 }
  0x35   :  { %297 = vmatpush3.msra.mxu1 %v154_v13 }
  0x36   :  { %298 = vmatprep.subr.mxu1 %v395_v0 }
  0x37   :  { %299 = vmatpush3.msra.mxu1 %v153_v14 }
  0x38   :  { %300 = vmatprep.subr.mxu1 %v395_v0 }
  0x39   :  { %301 = vmatpush3.msra.mxu1 %v152_v15 }
  0x3a   :  { %302 = vmatprep.subr.mxu1 %v395_v0 }
  0x3b   :  { %303 = vmatpush3.msra.mxu1 %v151_v16 }
  0x3c   :  { %304 = vmatprep.subr.mxu1 %v395_v0 }
  0x3d   :  { %305 = vmatpush3.msra.mxu1 %v150_v17 }
  0x3e   :  { %306 = vmatprep.subr.mxu1 %v395_v0 }
  0x3f   :  { %307 = vmatpush3.msra.mxu1 %v149_v18 }
  0x40   :  { %308 = vmatprep.subr.mxu1 %v395_v0 }
  0x41   :  { %309 = vmatpush3.msra.mxu1 %v148_v19 }
  0x42   :  { %310 = vmatprep.subr.mxu1 %v395_v0 }
  0x43   :  { %311 = vmatpush3.msra.mxu1 %v147_v20 }
  0x44   :  { %312 = vmatprep.subr.mxu1 %v395_v0 }
  0x45   :  { %313 = vmatpush3.msra.mxu1 %v146_v21 }
  0xee   :  { %v141_v23 = vpop.f32.mrf.mxu0 }
  0xef   :  { %v142_v24 = vadd.f32 %v246_v22, %v141_v23 }
  0xf0   :  { %v281_v25 = vpop.f32.mrf.mxu0 }
  0xf1   :  { %324 = vtanh.f32 %v142_v24 }
  0xfe   :  { %v325_v26 = vpop.eup %324 }
  0xff   :  { %315 = vmatmul.mubr.f32.vlgmr.msra.gmra.mxu1 %v325_v26 }
 0x1bf   :  { %v235_v28 = vpop.f32.mrf.mxu1 }
 0x1c0   :  { %v236_v29 = vadd.f32 %v248_v27, %v235_v28 }
 0x1c1   :  { %v316_v30 = vpop.f32.mrf.mxu1 }
 0x1c2   :  { %239 = vst [vmem:[%s472_s5] sm:$0xff] %v236_v29 }
 0x1c3   :  { %244 = vsyncpa [#allocation3], 1 }
 0x1c4   :  { %245 = vsyncpa [#allocation5], 1 }

// kernel: _head_call.1
= control target key start
LH: loop header
LB: loop body
LE: loop exit
PB: predicated region body
PF: predicated region fallthrough
CT: control target
= control target key end

     0   :  { %10 = vsyncpa [#allocation3], 0  ;;  %s467_s0 = inlined_call_operand.hbm [shape: f32[8,32], index: 0, kind: input, shape index: {}]   ;;  %s468_s1 = inlined_call_operand.hbm [shape: f32[32,128], index: 1, kind: input, shape index: {}]   ;;  %s469_s2 = inlined_call_operand.vmem [shape: f32[1,128], index: 2, kind: input, shape index: {}]   ;;  %s470_s3 = inlined_call_operand.hbm [shape: f32[128,128], index: 3, kind: input, shape index: {}]   ;;  %s471_s4 = inlined_call_operand.vmem [shape: f32[1,128], index: 4, kind: input, shape index: {}]   ;;  %s472_s5 = inlined_call_operand.vmem [shape: f32[8,128], index: 5, kind: output, shape index: {}]  }
   0x1   :  { %11 = vsyncpa [#allocation5], 0  ;;  %s390_s18 = smov [#allocation4]  }
   0x2   :  { %s27_s19 = sshll.u32 %s390_s18, 4  ;;  %s28_s19 = int_to_ptr.vmem [resolvable:$true] %s27_s19 }
   0x3   :  { %s334_s20 = scalar_lea.vmem %s28_s19, 512  ;;  %p339_p1 = scmp.lt.s32.totalorder %s28_s19, %s28_s19 }
   0x4   :  { %p335_p0 = scmp.ne.s32.totalorder %s28_s19, %s334_s20  ;;  %p340_p2 = scmp.lt.s32.totalorder %s334_s20, %s334_s20 }
   0x6   :  { %p341_p3 = por %p340_p2, %p339_p1 }
   0x8   :  { %p342_p4 = pnand %p341_p3, %p335_p0 }
   0xa   :  { %345 = shalt.err (!%p342_p4)
}
   0xb   :  { %s391_s21 = smov 128   ;;  %s392_s22 = smov 8  }
   0xc   :  { %33 = dma.hbm_to_vmem [thread:$0]  %s468_s1, 512, %s28_s19, [#allocation5], %s391_s21, %s391_s21, %s392_s22  }
   0xd   :  { %s393_s25 = smov [#allocation2]   ;;  %s394_s27 = smov [#allocation6]  }
   0xe   :  { %s18_s26 = sshll.u32 %s393_s25, 4  ;;  %s41_s28 = sshll.u32 %s394_s27, 4  ;;  %s19_s26 = int_to_ptr.vmem [resolvable:$true] %s18_s26  ;;  %s42_s28 = int_to_ptr.vmem [resolvable:$true] %s41_s28 }
   0xf   :  { %s354_s29 = scalar_lea.vmem %s19_s26, 128  ;;  %p359_p6 = scmp.lt.s32.totalorder %s19_s26, %s19_s26 }
  0x10   :  { %p355_p5 = scmp.ne.s32.totalorder %s19_s26, %s354_s29  ;;  %p360_p7 = scmp.lt.s32.totalorder %s354_s29, %s354_s29 }
  0x12   :  { %p361_p8 = por %p360_p7, %p359_p6 }
  0x14   :  { %p362_p9 = pnand %p361_p8, %p355_p5 }
  0x16   :  { %365 = shalt.err (!%p362_p9)
}
  0x17   :  { %21 = dma.hbm_to_vmem [thread:$0]  %s467_s0, 128, %s19_s26, [#allocation3]  }
  0x18   :  { %s374_s7 = scalar_lea.vmem %s42_s28, 2048  ;;  %p379_p11 = scmp.lt.s32.totalorder %s42_s28, %s42_s28 }
  0x19   :  { %p375_p10 = scmp.ne.s32.totalorder %s42_s28, %s374_s7  ;;  %p380_p12 = scmp.lt.s32.totalorder %s374_s7, %s374_s7 }
  0x1b   :  { %p381_p13 = por %p380_p12, %p379_p11 }
  0x1d   :  { %p382_p0 = pnand %p381_p13, %p375_p10 }
  0x1f   :  { %385 = shalt.err (!%p382_p0)
}
  0x20   :  { %47 = dma.hbm_to_vmem [thread:$0]  %s470_s3, 2048, %s42_s28, [#allocation5], %s391_s21, %s391_s21, %s392_s22  }
  0x21   :  { %386 = dma.done.wait [#allocation3], 128  }
  0x22   :  { %387 = vsyncadd [#allocation3], 4294967168 }
  0x23   :  { %388 = dma.done.wait [#allocation5], 2560  }
  0x24   :  { %389 = vsyncadd [#allocation5], 4294964736  ;;  %v395_v0 = vmov 0.0   ;;  %vm396_vm0 = vmmov 0   ;;  %v63_v1 = vld [vmem:[#allocation4 + $0x18] sm:$0xff]  ;;  %v62_v2 = vld [vmem:[#allocation4 + $0x10] sm:$0xff] }
  0x25   :  { %271 = vmatprep.subr.mxu0 %v395_v0  ;;  %279 = vmatprep.mubr.msk.f32.mxu0 %vm396_vm0, %v395_v0  ;;  %v161_v3 = vld [vmem:[#allocation6 + $0x78] sm:$0xff]  ;;  %v61_v4 = vld [vmem:[#allocation4 + $0x8] sm:$0xff]  ;;  %v160_v5 = vld [vmem:[#allocation6 + $0x70] sm:$0xff]  ;;  %vm71_vm1 = vcmask 261120  }
  0x26   :  { %282 = vmatprep.subr.mxu1 %v395_v0  ;;  %314 = vmatprep.mubr.msk.f32.mxu1 %vm396_vm0, %v395_v0  ;;  %v159_v6 = vld [vmem:[#allocation6 + $0x68] sm:$0xff]  ;;  %v60_v7 = vld [vmem:[#allocation4] sm:$0xff]  ;;  %v59_v8 = vld [vmem:[#allocation2] sm:$0xff] }
  0x27   :  { %272 = vmatpush3.msra.mxu0 %v63_v1  ;;  %283 = vmatpush3.msra.mxu1 %v161_v3  ;;  %v158_v9 = vld [vmem:[#allocation6 + $0x60] sm:$0xff]  ;;  %v157_v10 = vld [vmem:[#allocation6 + $0x58] sm:$0xff]  ;;  %v156_v11 = vld [vmem:[#allocation6 + $0x50] sm:$0xff] }
  0x28   :  { %273 = vmatprep.subr.mxu0 %v395_v0  ;;  %284 = vmatprep.subr.mxu1 %v395_v0  ;;  %v155_v12 = vld [vmem:[#allocation6 + $0x48] sm:$0xff]  ;;  %v154_v13 = vld [vmem:[#allocation6 + $0x40] sm:$0xff]  ;;  %v153_v14 = vld [vmem:[#allocation6 + $0x38] sm:$0xff] }
  0x29   :  { %274 = vmatpush3.msra.mxu0 %v62_v2  ;;  %285 = vmatpush3.msra.mxu1 %v160_v5  ;;  %v152_v15 = vld [vmem:[#allocation6 + $0x30] sm:$0xff]  ;;  %v151_v16 = vld [vmem:[#allocation6 + $0x28] sm:$0xff]  ;;  %v150_v17 = vld [vmem:[#allocation6 + $0x20] sm:$0xff] }
  0x2a   :  { %275 = vmatprep.subr.mxu0 %v395_v0  ;;  %286 = vmatprep.subr.mxu1 %v395_v0  ;;  %v149_v18 = vld [vmem:[#allocation6 + $0x18] sm:$0xff]  ;;  %v148_v19 = vld [vmem:[#allocation6 + $0x10] sm:$0xff]  ;;  %v147_v20 = vld [vmem:[#allocation6 + $0x8] sm:$0xff] }
  0x2b   :  { %276 = vmatpush3.msra.mxu0 %v61_v4  ;;  %287 = vmatpush3.msra.mxu1 %v159_v6  ;;  %v146_v21 = vld [vmem:[#allocation6] sm:$0xff]  ;;  %v246_v22 = vld [vmem:[%s469_s2] ss:$0 sm:$0xff] }
  0x2c   :  { %277 = vmatprep.subr.mxu0 %v395_v0  ;;  %288 = vmatprep.subr.mxu1 %v395_v0  ;;  %v248_v27 = vld [vmem:[%s471_s4] ss:$0 sm:$0xff] }
  0x2d   :  { %278 = vmatpush3.msra.mxu0 %v60_v7  ;;  %289 = vmatpush3.msra.mxu1 %v158_v9 }
  0x2e   :  { %280 = vmatmul.mubr.msk.f32.vlgmr.msra.gmra.mxu0 %vm71_vm1, %v59_v8  ;;  %290 = vmatprep.subr.mxu1 %v395_v0 }
  0x2f   :  { %291 = vmatpush3.msra.mxu1 %v157_v10 }
  0x30   :  { %292 = vmatprep.subr.mxu1 %v395_v0 }
  0x31   :  { %293 = vmatpush3.msra.mxu1 %v156_v11 }
  0x32   :  { %294 = vmatprep.subr.mxu1 %v395_v0 }
  0x33   :  { %295 = vmatpush3.msra.mxu1 %v155_v12 }
  0x34   :  { %296 = vmatprep.subr.mxu1 %v395_v0 }
  0x35   :  { %297 = vmatpush3.msra.mxu1 %v154_v13 }
  0x36   :  { %298 = vmatprep.subr.mxu1 %v395_v0 }
  0x37   :  { %299 = vmatpush3.msra.mxu1 %v153_v14 }
  0x38   :  { %300 = vmatprep.subr.mxu1 %v395_v0 }
  0x39   :  { %301 = vmatpush3.msra.mxu1 %v152_v15 }
  0x3a   :  { %302 = vmatprep.subr.mxu1 %v395_v0 }
  0x3b   :  { %303 = vmatpush3.msra.mxu1 %v151_v16 }
  0x3c   :  { %304 = vmatprep.subr.mxu1 %v395_v0 }
  0x3d   :  { %305 = vmatpush3.msra.mxu1 %v150_v17 }
  0x3e   :  { %306 = vmatprep.subr.mxu1 %v395_v0 }
  0x3f   :  { %307 = vmatpush3.msra.mxu1 %v149_v18 }
  0x40   :  { %308 = vmatprep.subr.mxu1 %v395_v0 }
  0x41   :  { %309 = vmatpush3.msra.mxu1 %v148_v19 }
  0x42   :  { %310 = vmatprep.subr.mxu1 %v395_v0 }
  0x43   :  { %311 = vmatpush3.msra.mxu1 %v147_v20 }
  0x44   :  { %312 = vmatprep.subr.mxu1 %v395_v0 }
  0x45   :  { %313 = vmatpush3.msra.mxu1 %v146_v21 }
  0xee   :  { %v141_v23 = vpop.f32.mrf.mxu0 }
  0xef   :  { %v142_v24 = vadd.f32 %v246_v22, %v141_v23 }
  0xf0   :  { %v281_v25 = vpop.f32.mrf.mxu0 }
  0xf1   :  { %324 = vtanh.f32 %v142_v24 }
  0xfe   :  { %v325_v26 = vpop.eup %324 }
  0xff   :  { %315 = vmatmul.mubr.f32.vlgmr.msra.gmra.mxu1 %v325_v26 }
 0x1bf   :  { %v235_v28 = vpop.f32.mrf.mxu1 }
 0x1c0   :  { %v236_v29 = vadd.f32 %v248_v27, %v235_v28 }
 0x1c1   :  { %v316_v30 = vpop.f32.mrf.mxu1 }
 0x1c2   :  { %239 = vst [vmem:[%s472_s5] sm:$0xff] %v236_v29 }
 0x1c3   :  { %244 = vsyncpa [#allocation3], 1 }
 0x1c4   :  { %245 = vsyncpa [#allocation5], 1 }

</bundles_post_ra>
